<compile_context>
chip_gen: v5e
topology: v5e:2x2
jax: 0.10.0
libtpu: 0.0.40
codegen_flags: <defaults>
</compile_context>

<pallas_src>
import functools
import math

import jax
import jax.numpy as jnp
from jax import lax
from jax.experimental import pallas as pl
from jax.experimental.pallas import tpu as pltpu

_LANE = 128


def _round_down(v: int, m: int) -> int:
    return (v // m) * m


def _round_up(v: int, m: int) -> int:
    return ((v + m - 1) // m) * m


def _sublane(dtype) -> int:
    """Sublane packing granularity for the input dtype (f32:8, bf16:16, int8/fp8:32)."""
    return {4: 8, 2: 16, 1: 32}.get(jnp.dtype(dtype).itemsize, 8)


def _vmem_plan():
    """(per-block budget bytes, vmem_limit_bytes), sized per TPU generation."""
    try:
        cap = int(getattr(pltpu.get_tpu_info(), "vmem_capacity_bytes", 64 << 20))
    except Exception:
        cap = 64 << 20
    if cap >= (100 << 20):          # v5e / v6e: 128 MiB physical VMEM
        return 12 << 20, 96 << 20
    return 10 << 20, 48 << 20       # v7x: 64 MiB physical VMEM


def _pick_reduce_tile(total: int, cap: int, step: int) -> int:
    """Largest `step`-multiple <= cap, preferring one that exactly divides `total`."""
    cap = max(step, _round_down(cap, step))
    t = min(cap, _round_down(total, step))
    while t >= max(step, cap // 2):
        if total % t == 0:
            return t
        t -= step
    return cap


# --------------------------------------------------------------------------- #
# Kernels
# --------------------------------------------------------------------------- #
def _mean_kernel_lastdim(x_ref, o_ref, acc_ref, *, inv_r, reduce_sz, r_tile, chunk,
                         mask_reduce):
    """Mean over the last dim (inner == 1).

    x_ref:   (o_tile, r_tile)          input tile (outer rows x reduce columns)
    o_ref:   (1, o_tile // 128, 128)   lane-dense output tile (outer rows on lanes)
    acc_ref: (o_tile, chunk) f32       per-lane partial sums (chunk = min(R, 128))
    """
    k = pl.program_id(1)

    @pl.when(k == 0)
    def _init():
        acc_ref[...] = jnp.zeros_like(acc_ref)

    # Hot loop: per-lane partial sums only (pure VPU adds, no cross-lane work).
    n_chunks = -(-r_tile // chunk)
    for j in range(n_chunks):
        w = min(chunk, r_tile - j * chunk)
        c = x_ref[:, j * chunk:j * chunk + w].astype(jnp.float32)
        if mask_reduce:
            lane = lax.broadcasted_iota(jnp.int32, (1, w), 1)
            c = jnp.where(k * r_tile + j * chunk + lane < reduce_sz, c, 0.0)
        acc_ref[:, 0:w] += c

    # Finalize (once per outer block): cross-lane reduce + pack results onto lanes.
    @pl.when(k == pl.num_programs(1) - 1)
    def _finalize():
        diag = (lax.broadcasted_iota(jnp.int32, (_LANE, _LANE), 0) ==
                lax.broadcasted_iota(jnp.int32, (_LANE, _LANE), 1))
        for i in range(o_ref.shape[1]):
            blk = acc_ref[i * _LANE:(i + 1) * _LANE, :]                # (128, chunk)
            col = jnp.sum(blk, axis=1, keepdims=True)                  # (128, 1) f32
            # "Transpose" the column onto lanes: diagonal select of a broadcast +
            # sublane reduce (exact f32, no matmul / explicit transpose needed).
            row = jnp.sum(jnp.where(diag, col, 0.0), axis=0, keepdims=True)  # (1, 128)
            o_ref[:, i:i + 1, :] = (row * inv_r).astype(o_ref.dtype).reshape(1, 1, _LANE)


def _mean_kernel_3d(x_ref, o_ref, acc_ref, *, inv_r, reduce_sz, r_tile, r_slab,
                    mask_reduce):
    """Mean over a middle dim.

    x_ref:   (o_tile, r_tile, lane_tile)   reduce over axis 1
    o_ref:   (o_tile, lane_tile)
    acc_ref: (o_tile, lane_tile) f32
    """
    k = pl.program_id(2)

    @pl.when(k == 0)
    def _init():
        acc_ref[...] = jnp.zeros_like(acc_ref)

    n_slabs = -(-r_tile // r_slab)
    for j in range(n_slabs):
        w = min(r_slab, r_tile - j * r_slab)
        xs = x_ref[:, j * r_slab:j * r_slab + w, :]
        if mask_reduce:
            r_idx = (k * r_tile + j * r_slab +
                     lax.broadcasted_iota(jnp.int32, (1, w, 1), 1))
            xs = jnp.where(r_idx < reduce_sz, xs, jnp.zeros((), xs.dtype))
        acc_ref[...] += jnp.sum(xs, axis=1, dtype=jnp.float32)

    @pl.when(k == pl.num_programs(2) - 1)
    def _finalize():
        o_ref[...] = (acc_ref[...] * inv_r).astype(o_ref.dtype)


# --------------------------------------------------------------------------- #
# Wrappers
# --------------------------------------------------------------------------- #
def _mean_lastdim_pallas(x2, outer, R, inv_r, budget, vmem_limit):
    dtype = x2.dtype
    itemsize = jnp.dtype(dtype).itemsize

    # Outer tile: multiple of 128 rows (they become output lanes), <= outer,
    # <= 1024 (keeps the f32 accumulator <= 512 KiB), sized against the budget.
    o_max = _round_down(outer, _LANE)
    row_bytes = min(R, 32 * _LANE) * itemsize
    o_budget = _round_down(budget // max(1, row_bytes), _LANE)
    o_tile = max(_LANE, min(o_max, max(_LANE, o_budget), 1024))
    if pl.cdiv(outer, o_tile) == 1 and o_max >= 2 * _LANE:
        o_tile = _round_up(o_max // 2, _LANE)      # keep >= 2 parallel blocks (megacore)
    n_ob = pl.cdiv(outer, o_tile)

    # Reduce tile: full R when it fits (one contiguous HBM read per outer row),
    # otherwise a multiple of 128 that preferably divides R (no per-step mask).
    if R < _LANE:
        chunk, r_tile = R, R
    else:
        chunk = _LANE
        r_cap = _round_down(budget // max(1, o_tile * itemsize), _LANE)
        r_cap = max(_LANE, min(r_cap, 32 * _LANE))          # bound in-kernel unroll
        r_tile = R if R <= r_cap else _pick_reduce_tile(R, r_cap, _LANE)
    n_k = pl.cdiv(R, r_tile)
    mask_reduce = (R % r_tile) != 0

    kernel = functools.partial(_mean_kernel_lastdim, inv_r=inv_r, reduce_sz=R,
                               r_tile=r_tile, chunk=chunk, mask_reduce=mask_reduce)
    out = pl.pallas_call(
        kernel,
        out_shape=jax.ShapeDtypeStruct((n_ob, o_tile // _LANE, _LANE), dtype),
        grid_spec=pltpu.PrefetchScalarGridSpec(
            num_scalar_prefetch=0,
            grid=(n_ob, n_k),
            in_specs=[pl.BlockSpec((o_tile, r_tile), lambda o, k: (o, k))],
            out_specs=pl.BlockSpec((1, o_tile // _LANE, _LANE), lambda o, k: (o, 0, 0)),
            scratch_shapes=[pltpu.VMEM((o_tile, chunk), jnp.float32)],
        ),
        compiler_params=pltpu.CompilerParams(
            dimension_semantics=("parallel", "arbitrary"),
            vmem_limit_bytes=vmem_limit,
        ),
        cost_estimate=pl.CostEstimate(
            flops=outer * R + outer, transcendentals=0,
            bytes_accessed=(outer * R + outer) * itemsize),
    )(x2)
    # Drop the lane-padding rows (>= outer) added so results could sit on lanes.
    return out.reshape(-1)[:outer]


def _mean_3d_pallas(x3, outer, R, inner, inv_r, budget, vmem_limit):
    dtype = x3.dtype
    itemsize = jnp.dtype(dtype).itemsize
    sub = _sublane(dtype)

    # Lane tile: prefer the full inner extent (contiguous HBM reads, lane-dense
    # stores); only tile lanes if even a minimal (o, r) footprint busts the budget.
    lane_tile = inner
    o_floor = min(outer, sub)
    if o_floor * sub * lane_tile * itemsize > budget:
        lane_tile = max(_LANE,
                        _round_down(budget // max(1, o_floor * sub * itemsize), _LANE))

    # Outer tile: bound the f32 accumulator / output block (~512 KiB of rows).
    o_cap = max(1, (512 * 1024) // max(1, lane_tile * 4))
    o_tile = outer if outer <= o_cap else min(outer, max(sub, _round_down(o_cap, sub)))

    # Reduce tile: fill the block budget; prefer a divisor of R (no per-step mask).
    r_cap = max(sub, _round_down(budget // max(1, o_tile * lane_tile * itemsize), sub))
    r_tile = R if R <= r_cap else _pick_reduce_tile(R, r_cap, sub)
    mask_reduce = (R % r_tile) != 0

    # Megacore (v7x): make sure the parallel grid axes hold at least two blocks.
    if pl.cdiv(outer, o_tile) * pl.cdiv(inner, lane_tile) == 1:
        if outer >= 2 * sub:
            o_tile = max(sub, _round_up(-(-outer // 2), sub))
        elif lane_tile == inner and inner >= 2 * 512:
            lane_tile = max(_LANE, _round_up(-(-inner // 2), _LANE))

    # In-kernel slab over the reduce rows: bounds live vregs, keeps unroll <= 16.
    slab_rows = _round_down((1 << 20) // max(1, o_tile * lane_tile * itemsize), sub)
    r_slab = min(r_tile, max(sub, slab_rows, _round_up(-(-r_tile // 16), sub)))

    grid = (pl.cdiv(outer, o_tile), pl.cdiv(inner, lane_tile), pl.cdiv(R, r_tile))
    kernel = functools.partial(_mean_kernel_3d, inv_r=inv_r, reduce_sz=R,
                               r_tile=r_tile, r_slab=r_slab, mask_reduce=mask_reduce)
    out = pl.pallas_call(
        kernel,
        out_shape=jax.ShapeDtypeStruct((outer, inner), dtype),
        grid_spec=pltpu.PrefetchScalarGridSpec(
            num_scalar_prefetch=0,
            grid=grid,
            in_specs=[pl.BlockSpec((o_tile, r_tile, lane_tile),
                                   lambda o, i, k: (o, k, i))],
            out_specs=pl.BlockSpec((o_tile, lane_tile), lambda o, i, k: (o, i)),
            scratch_shapes=[pltpu.VMEM((o_tile, lane_tile), jnp.float32)],
        ),
        compiler_params=pltpu.CompilerParams(
            dimension_semantics=("parallel", "parallel", "arbitrary"),
            vmem_limit_bytes=vmem_limit,
        ),
        cost_estimate=pl.CostEstimate(
            flops=outer * R * inner + outer * inner, transcendentals=0,
            bytes_accessed=(outer * R * inner + outer * inner) * itemsize),
    )(x3)
    return out


def mean_pallas(x: jax.Array, dim: int) -> jax.Array:
    """Equivalent of torch.mean(x, dim=dim) (dtype preserving, f32 accumulation)."""
    ndim = x.ndim
    if dim < 0:
        dim += ndim
    if not (0 <= dim < ndim):
        raise ValueError(f"dim {dim} out of range for rank {ndim}")

    shape = x.shape
    outer = math.prod(shape[:dim])
    R = shape[dim]
    inner = math.prod(shape[dim + 1:])
    out_shape = shape[:dim] + shape[dim + 1:]

    if R == 0 or outer == 0 or inner == 0:
        return jnp.mean(x, axis=dim)          # degenerate shapes

    inv_r = 1.0 / float(R)
    budget, vmem_limit = _vmem_plan()

    if inner == 1:
        if outer < _LANE:
            # Fewer outputs than one lane's width: not worth a Pallas launch.
            return jnp.mean(x, axis=dim)
        return _mean_lastdim_pallas(x.reshape(outer, R), outer, R, inv_r,
                                    budget, vmem_limit).reshape(out_shape)

    if inner < _LANE:
        # TODO(synk): sub-128 output lane width => masked vst + tiny strided DMAs;
        # per the perf review this corner is handed to XLA rather than running a
        # badly shaped Pallas grid.
        return jnp.mean(x, axis=dim)

    return _mean_3d_pallas(x.reshape(outer, R, inner), outer, R, inner, inv_r,
                           budget, vmem_limit).reshape(out_shape)


class Mean:
    """Drop-in equivalent of the PyTorch `Mean` module."""

    def __init__(self, dim: int) -> None:
        self.dim = dim

    def __call__(self, x: jax.Array) -> jax.Array:
        return mean_pallas(x, self.dim)


if __name__ == "__main__":
    key = jax.random.PRNGKey(0)
    k1, k2 = jax.random.split(key)

    # Small NCHW-like input, consistent with typical use of Mean(dim=1).
    x = jax.random.normal(k1, (2, 4, 16, 16), dtype=jnp.float32)

    # dim=1 -> general (outer, reduce, inner) Pallas path with inner on lanes.
    out = jax.block_until_ready(Mean(1)(x))
    ref = jnp.mean(x, axis=1)
    assert out.shape == ref.shape, (out.shape, ref.shape)
    assert jnp.allclose(out, ref, atol=1e-5, rtol=1e-5), "mismatch vs reference (dim=1)"

    # dim=-1 -> lane-dense last-dim path (128 outer rows packed onto output lanes).
    out_last = jax.block_until_ready(Mean(-1)(x))
    ref_last = jnp.mean(x, axis=-1)
    assert out_last.shape == ref_last.shape
    assert jnp.allclose(out_last, ref_last, atol=1e-5, rtol=1e-5), "mismatch (dim=-1)"

    # Ragged reduce length: exercises partial-chunk accumulation + 2 outer blocks.
    y = jax.random.normal(k2, (256, 200), dtype=jnp.float32)
    out_y = jax.block_until_ready(Mean(-1)(y))
    ref_y = jnp.mean(y, axis=-1)
    assert out_y.shape == ref_y.shape
    assert jnp.allclose(out_y, ref_y, atol=1e-5, rtol=1e-5), "mismatch (256x200, dim=-1)"

    print("KERNEL_OK")
</pallas_src>

<mosaic_0001>
module attributes {stable_mosaic.version = 11 : i64} {
  func.func @_mean_kernel_3d(%arg0: i32, %arg1: i32, %arg2: i32, %arg3: memref<2x4x256xf32, #tpu.memory_space<vmem>>, %arg4: memref<2x256xf32, #tpu.memory_space<vmem>>, %arg5: memref<2x256xf32, #tpu.memory_space<vmem>>) attributes {dimension_semantics = [#tpu.dimension_semantics<parallel>, #tpu.dimension_semantics<parallel>, #tpu.dimension_semantics<arbitrary>], iteration_bounds = array<i64: 1, 1, 1>, scalar_prefetch = 0 : i64, scratch_operands = 1 : i64, tpu.core_type = #tpu.core_type<tc>, window_params = [{transform_indices = @transform_0, window_bounds = array<i64: 2, 4, 256>}, {transform_indices = @transform_1, window_bounds = array<i64: 2, 256>}]} {
    %c0_i32 = arith.constant 0 : i32
    %0 = arith.cmpi eq, %arg2, %c0_i32 : i32
    %1 = arith.extui %0 : i1 to i32
    %c0_i32_0 = arith.constant 0 : i32
    %2 = arith.cmpi ne, %1, %c0_i32_0 : i32
    scf.if %2 {
      %cst_9 = arith.constant 0.000000e+00 : f32
      %11 = vector.broadcast %cst_9 : f32 to vector<2x256xf32>
      %c0_10 = arith.constant 0 : index
      %c0_11 = arith.constant 0 : index
      %12 = vector.load %arg5[%c0_10, %c0_11] : memref<2x256xf32, #tpu.memory_space<vmem>>, vector<2x256xf32>
      tpu.vector_store %arg5[%c0_10, %c0_11], %11 {strides = array<i32>} : memref<2x256xf32, #tpu.memory_space<vmem>>, vector<2x256xf32>,
    } else {
    }
    %c0 = arith.constant 0 : index
    %c0_1 = arith.constant 0 : index
    %c0_2 = arith.constant 0 : index
    %3 = vector.load %arg3[%c0, %c0_1, %c0_2] : memref<2x4x256xf32, #tpu.memory_space<vmem>>, vector<2x4x256xf32>
    %c0_3 = arith.constant 0 : index
    %c0_4 = arith.constant 0 : index
    %4 = vector.load %arg5[%c0_3, %c0_4] : memref<2x256xf32, #tpu.memory_space<vmem>>, vector<2x256xf32>
    %cst = arith.constant dense<0.000000e+00> : vector<2x256xf32>
    %5 = vector.multi_reduction <add>, %3, %cst [1] : vector<2x4x256xf32> to vector<2x256xf32>
    %6 = arith.addf %4, %5 : vector<2x256xf32>
    %c0_5 = arith.constant 0 : index
    %c0_6 = arith.constant 0 : index
    %7 = vector.load %arg5[%c0_5, %c0_6] : memref<2x256xf32, #tpu.memory_space<vmem>>, vector<2x256xf32>
    tpu.vector_store %arg5[%c0_5, %c0_6], %6 {strides = array<i32>} : memref<2x256xf32, #tpu.memory_space<vmem>>, vector<2x256xf32>,
    %c0_i32_7 = arith.constant 0 : i32
    %8 = arith.cmpi eq, %arg2, %c0_i32_7 : i32
    %9 = arith.extui %8 : i1 to i32
    %c0_i32_8 = arith.constant 0 : i32
    %10 = arith.cmpi ne, %9, %c0_i32_8 : i32
    scf.if %10 {
      %c0_9 = arith.constant 0 : index
      %c0_10 = arith.constant 0 : index
      %11 = vector.load %arg5[%c0_9, %c0_10] : memref<2x256xf32, #tpu.memory_space<vmem>>, vector<2x256xf32>
      %cst_11 = arith.constant 2.500000e-01 : f32
      %12 = vector.broadcast %cst_11 : f32 to vector<2x256xf32>
      %13 = arith.mulf %11, %12 : vector<2x256xf32>
      %c0_12 = arith.constant 0 : index
      %c0_13 = arith.constant 0 : index
      %14 = vector.load %arg4[%c0_12, %c0_13] : memref<2x256xf32, #tpu.memory_space<vmem>>, vector<2x256xf32>
      tpu.vector_store %arg4[%c0_12, %c0_13], %13 {strides = array<i32>} : memref<2x256xf32, #tpu.memory_space<vmem>>, vector<2x256xf32>,
    } else {
    }
    return
  }
  func.func @transform_0(%arg0: i32, %arg1: i32, %arg2: i32) -> (i32, i32, i32) {
    %c0_i32 = arith.constant 0 : i32
    return %arg0, %arg2, %arg1 : i32, i32, i32
  }
  func.func @transform_1(%arg0: i32, %arg1: i32, %arg2: i32) -> (i32, i32) {
    %c0_i32 = arith.constant 0 : i32
    return %arg0, %arg1 : i32, i32
  }
}

</mosaic_0001>

<bundles_post_ra>
// kernel: tpu_custom_call.1
= control target key start
LH: loop header
LB: loop body
LE: loop exit
PB: predicated region body
PF: predicated region fallthrough
CT: control target
= control target key end

     0   :  { %6 = vsyncpa [#allocation4], 0  ;;  %s201_s0 = inlined_call_operand.hbm [shape: f32[2,4,256], index: 0, kind: input, shape index: {}]   ;;  %s202_s1 = inlined_call_operand.hbm [shape: f32[2,256], index: 1, kind: output, shape index: {}]  }
   0x1   :  { %7 = vsyncpa [#allocation5], 0  ;;  %s12_s8 = sshll.u32 %s201_s0, 4  ;;  %s180_s9 = smov [#allocation3]   ;;  %s13_s8 = int_to_ptr.hbm [resolvable:$true] %s12_s8 }
   0x2   :  { %s14_s10 = sshll.u32 %s180_s9, 4  ;;  %s181_s11 = smov 128   ;;  %s15_s10 = int_to_ptr.vmem [resolvable:$true] %s14_s10 }
   0x3   :  { %s182_s12 = smov 8  }
   0x4   :  { %20 = dma.hbm_to_vmem [thread:$0]  %s13_s8, 256, %s15_s10, [#allocation4], %s181_s11, %s181_s11, %s182_s12  }
   0x5   :  { %176 = dma.done.wait [#allocation4], 256  }
   0x6   :  { %177 = vsyncadd [#allocation4], 4294967040  ;;  %v183_v0 = vmov 0.0   ;;  %v30_v1 = vld [vmem:[#allocation3] sm:$0xff]  ;;  %v31_v2 = vld [vmem:[#allocation3 + $0x8] sm:$0xff]  ;;  %vm46_vm0 = vcmask 1043456  }
   0x7   :  { %29 = vst [vmem:[#allocation2] sm:$0xf] %v183_v0  ;;  %vm81_vm1 = vcmask 1041408   ;;  %vm89_vm2 = vcmask 1041409   ;;  %vm91_vm3 = vcmask 1043459   ;;  %vm93_vm4 = vcmask 1045509  }
   0x8   :  { %35 = vst [vmem:[#allocation1] ss:$2 sm:$0xff] %v30_v1  ;;  %vm95_vm5 = vcmask 1047559   ;;  %s184_s0 = smov [#allocation6]   ;;  %s113_s16 = sshll.u32 %s202_s1, 4  ;;  %s114_s16 = int_to_ptr.hbm [resolvable:$true] %s113_s16 }
   0x9   :  { %39 = vst [vmem:[#allocation1 + $0x10] ss:$2 sm:$0xff] %v31_v2  ;;  %s111_s13 = sshll.u32 %s184_s0, 4  ;;  %s112_s13 = int_to_ptr.vmem [resolvable:$true] %s111_s13 }
   0xe   :  { %v32_v41 = vld [vmem:[#allocation2] sm:$0xf] }
   0xf   :  { %v36_v3 = vld.sshfl [vmem:[#allocation1] sm:$0xff pattern:$0x75316420]  ;;  %v37_v4 = vld.sshfl [vmem:[#allocation1 + $0x8] sm:$0xff pattern:$0x75316420] }
  0x10   :  { %v40_v5 = vld.sshfl [vmem:[#allocation1 + $0x10] sm:$0xff pattern:$0x75316420]  ;;  %v41_v6 = vld.sshfl [vmem:[#allocation1 + $0x18] sm:$0xff pattern:$0x75316420] }
  0x11   :  { %v47_v7 = vsel %vm46_vm0, %v36_v3, 0.0  ;;  %v54_v8 = vsel %vm46_vm0, %v37_v4, 0.0  ;;  %v61_v9 = vsel %vm46_vm0, %v40_v5, 0.0  ;;  %v68_v10 = vsel %vm46_vm0, %v41_v6, 0.0 }
  0x12   :  { %v48_v11 = vrot.slane %v47_v7, 4  ;;  %v55_v12 = vrot.slane %v54_v8, 4  ;;  %v62_v13 = vrot.slane %v61_v9, 4  ;;  %v69_v14 = vrot.slane %v68_v10, 4 }
  0x14   :  { %v49_v15 = vadd.f32 %v48_v11, %v47_v7  ;;  %v56_v16 = vadd.f32 %v55_v12, %v54_v8  ;;  %v63_v17 = vadd.f32 %v62_v13, %v61_v9  ;;  %v70_v18 = vadd.f32 %v69_v14, %v68_v10 }
  0x16   :  { %v50_v19 = vrot.slane %v49_v15, 2  ;;  %v57_v20 = vrot.slane %v56_v16, 2  ;;  %v64_v21 = vrot.slane %v63_v17, 2  ;;  %v71_v22 = vrot.slane %v70_v18, 2 }
  0x18   :  { %v51_v23 = vadd.f32 %v50_v19, %v49_v15  ;;  %v58_v24 = vadd.f32 %v57_v20, %v56_v16  ;;  %v65_v25 = vadd.f32 %v64_v21, %v63_v17  ;;  %v72_v26 = vadd.f32 %v71_v22, %v70_v18 }
  0x1a   :  { %v59_v27 = vrot.slane %v58_v24, 1  ;;  %v66_v28 = vrot.slane %v65_v25, 1  ;;  %v73_v29 = vrot.slane %v72_v26, 1  ;;  %v52_v30 = vrot.slane %v51_v23, 1 }
  0x1c   :  { %v60_v31 = vadd.f32 %v59_v27, %v58_v24  ;;  %v74_v32 = vadd.f32 %v73_v29, %v72_v26  ;;  %v67_v33 = vadd.f32 %v66_v28, %v65_v25  ;;  %v53_v36 = vadd.f32 %v52_v30, %v51_v23 }
  0x1e   :  { %v79_v34 = vrot.slane %v60_v31, 6  ;;  %v80_v35 = vrot.slane %v74_v32, 6 }
  0x20   :  { %v83_v37 = vsel %vm81_vm1, %v67_v33, %v80_v35  ;;  %v82_v39 = vsel %vm81_vm1, %v53_v36, %v79_v34 }
  0x21   :  { %v88_v38 = vrot.slane %v83_v37, 7 }
  0x23   :  { %v90_v40 = vsel %vm89_vm2, %v88_v38, %v82_v39 }
  0x24   :  { %v92_v42 = vsel %vm91_vm3, %v88_v38, %v90_v40 }
  0x25   :  { %v94_v43 = vsel %vm93_vm4, %v88_v38, %v92_v42 }
  0x26   :  { %v96_v44 = vsel %vm95_vm5, %v88_v38, %v94_v43 }
  0x27   :  { %v98_v45 = vadd.f32 %v96_v44, %v32_v41 }
  0x29   :  { %99 = vst [vmem:[#allocation2] sm:$0xf] %v98_v45 }
  0x30   :  { %v103_v46 = vld [vmem:[#allocation2] sm:$0xf] }
  0x31   :  { %v104_v47 = vmul.f32 0.25, %v103_v46 }
  0x33   :  { %105 = vst [vmem:[#allocation6] sm:$0xf] %v104_v47 }
  0x34   :  { %116 = dma.vmem_to_hbm [thread:$0]  %s112_s13, 64, %s114_s16, [#allocation5]  }
  0x35   :  { %178 = dma.done.wait [#allocation5], 64  }
  0x36   :  { %179 = vsyncadd [#allocation5], 4294967232 }
  0x37   :  { %121 = vsyncpa [#allocation4], 1 }
  0x38   :  { %122 = vsyncpa [#allocation5], 1 }

</bundles_post_ra>
